<compile_context>
chip_gen: v6e
topology: v6e:2x2x1
jax: 0.10.0
libtpu: 0.0.40
codegen_flags: <defaults>
</compile_context>

<pallas_src>
import jax
import jax.numpy as jnp
from jax.experimental import pallas as pl
from jax.experimental.pallas import tpu as pltpu

EPS = 1e-5


def _round_up(x, m):
    return (x + m - 1) // m * m


def fold_bn(gamma, beta, mean, var, eps=EPS):
    scale = gamma / jnp.sqrt(var + eps)
    return scale, beta - mean * scale


# ----------------------------- Pallas kernel --------------------------------

def _make_block_kernel(*, Cin, planes, Ho, Wo, Wsrc, W1p, Ls1,
                       taps1, taps2, sc_phase, sc_off, has_proj):
    """Whole BasicBlock for ONE image.

    Layout: channels on sublanes, flattened (row*width+col) space on lanes,
    i.e. out = W @ X, so the large spatial dim is lane-dense.
    Each conv = 9 shifted matmuls over a flattened zero-padded source buffer;
    the "wide" outputs carry a few garbage boundary columns that are dropped
    (conv1: when scattering into the conv2 source; conv2: at the final store).
    """
    M1 = Ho * Wsrc          # conv1 / shortcut wide-output length
    M2 = Ho * W1p           # conv2 wide-output length

    def body(x_ref, w1_ref, b1_ref, w2_ref, b2_ref, ws_ref, o_ref, s1_ref):
        # x_ref : (P*Cin, L)        bf16  phase-decomposed padded input (1 image)
        # w1_ref: (planes, 9*Cin)   bf16  conv1 weight, BN1 scale folded in
        # b1_ref: (planes, 1)       f32   BN1 bias
        # w2_ref: (planes, 9*planes)bf16  conv2 weight, BN2 scale folded in
        # b2_ref: (planes, 1)       f32   BN2 bias (+ shortcut BN bias)
        # ws_ref: (planes, Cin)     bf16  projection shortcut weight (or None)
        # o_ref : (planes, Ho*Wo)   f32   block output
        # s1_ref: (planes, Ls1)     bf16  VMEM scratch: zero-padded out1

        # ---- conv1 + bn1 + relu: 9 shifted matmuls, f32 accumulation --------
        acc1 = jnp.zeros((planes, M1), jnp.float32)
        for t, (p, off) in enumerate(taps1):
            xt = x_ref[pl.ds(p * Cin, Cin), pl.ds(off, M1)]        # (Cin, M1)
            wt = w1_ref[:, pl.ds(t * Cin, Cin)]                    # (planes, Cin)
            acc1 = acc1 + jnp.dot(wt, xt, preferred_element_type=jnp.float32)
        out1 = jnp.maximum(acc1 + b1_ref[...], 0.0).astype(jnp.bfloat16)

        # ---- scatter valid columns of out1 into the zero-padded conv2 source
        s1_ref[...] = jnp.zeros((planes, Ls1), jnp.bfloat16)
        for r in range(Ho):
            s1_ref[:, pl.ds((r + 1) * W1p + 1, Wo)] = \
                out1[:, r * Wsrc:r * Wsrc + Wo]

        # ---- conv2 + bn2: 9 shifted matmuls over the padded out1 ------------
        acc2 = jnp.zeros((planes, M2), jnp.float32)
        for t, off in enumerate(taps2):
            st = s1_ref[:, pl.ds(off, M2)]                         # (planes, M2)
            wt = w2_ref[:, pl.ds(t * planes, planes)]              # (planes, planes)
            acc2 = acc2 + jnp.dot(wt, st, preferred_element_type=jnp.float32)
        acc2 = acc2 + b2_ref[...]

        # ---- shortcut (fused): projection -> MXU matmul, identity -> VPU add
        xs = x_ref[pl.ds(sc_phase * Cin, Cin), pl.ds(sc_off, M1)]  # (Cin, M1)
        if has_proj:
            sc = jnp.dot(ws_ref[...], xs, preferred_element_type=jnp.float32)
        else:
            sc = xs.astype(jnp.float32)                            # Cin == planes

        # ---- residual add + relu; compact wide rows (drop garbage columns) --
        for r in range(Ho):
            row = acc2[:, r * W1p:r * W1p + Wo] + sc[:, r * Wsrc:r * Wsrc + Wo]
            o_ref[:, pl.ds(r * Wo, Wo)] = \
                jnp.maximum(row, 0.0).astype(o_ref.dtype)

    if has_proj:
        def kernel(x_ref, w1_ref, b1_ref, w2_ref, b2_ref, ws_ref, o_ref, s1_ref):
            body(x_ref, w1_ref, b1_ref, w2_ref, b2_ref, ws_ref, o_ref, s1_ref)
    else:
        def kernel(x_ref, w1_ref, b1_ref, w2_ref, b2_ref, o_ref, s1_ref):
            body(x_ref, w1_ref, b1_ref, w2_ref, b2_ref, None, o_ref, s1_ref)
    return kernel


# ------------------------------- wrapper -------------------------------------

def basic_block_forward(x_nchw, params, stride):
    """x: (N, Cin, H, W) f32 (PyTorch NCHW). Returns (N, planes, Ho, Wo) f32."""
    N, Cin, H, W = x_nchw.shape
    planes = params["conv1_w"].shape[0]
    assert stride in (1, 2)
    Ho = (H + 2 - 3) // stride + 1
    Wo = (W + 2 - 3) // stride + 1
    has_proj = (stride != 1) or (Cin != planes)

    # ---- glue: zero-pad, (optionally) phase-decompose, flatten. NO im2col ---
    x_bf = x_nchw.astype(jnp.bfloat16)
    xp = jnp.pad(x_bf, ((0, 0), (0, 0), (1, 1), (1, 1)))
    if stride == 1:
        P = 1
        Hsrc, Wsrc = H + 2, W + 2
        phase_list = [xp]
        taps1 = [(0, kh * Wsrc + kw) for kh in range(3) for kw in range(3)]
        sc_phase, sc_off = 0, Wsrc + 1
    else:
        if xp.shape[2] % 2:
            xp = jnp.pad(xp, ((0, 0), (0, 0), (0, 1), (0, 0)))
        if xp.shape[3] % 2:
            xp = jnp.pad(xp, ((0, 0), (0, 0), (0, 0), (0, 1)))
        P = 4
        Hsrc, Wsrc = xp.shape[2] // 2, xp.shape[3] // 2
        phase_list = [xp[:, :, a::2, b::2] for a in range(2) for b in range(2)]
        taps1 = [((kh % 2) * 2 + (kw % 2), (kh // 2) * Wsrc + (kw // 2))
                 for kh in range(3) for kw in range(3)]
        sc_phase, sc_off = 3, 0          # phase (1,1), offset 0

    M1 = Ho * Wsrc
    L = _round_up(M1 + 2 * Wsrc + 2, 128)       # covers all tap shifts, lane-aligned
    flat = [jnp.pad(p.reshape(N, Cin, Hsrc * Wsrc),
                    ((0, 0), (0, 0), (0, L - Hsrc * Wsrc))) for p in phase_list]
    xph = jnp.concatenate(flat, axis=1) if P > 1 else flat[0]     # (N, P*Cin, L)

    W1p = Wo + 2
    M2 = Ho * W1p
    Ls1 = _round_up(M2 + 2 * W1p + 2, 128)
    taps2 = [kh * W1p + kw for kh in range(3) for kw in range(3)]

    # ---- fold BN (inference / running stats) into weights & biases ----------
    s1c, b1c = fold_bn(params["bn1_gamma"], params["bn1_beta"],
                       params["bn1_mean"], params["bn1_var"])
    s2c, b2c = fold_bn(params["bn2_gamma"], params["bn2_beta"],
                       params["bn2_mean"], params["bn2_var"])
    w1 = (jnp.transpose(params["conv1_w"], (0, 2, 3, 1)).reshape(planes, 9 * Cin)
          * s1c[:, None]).astype(jnp.bfloat16)
    w2 = (jnp.transpose(params["conv2_w"], (0, 2, 3, 1)).reshape(planes, 9 * planes)
          * s2c[:, None]).astype(jnp.bfloat16)
    b1 = b1c.reshape(planes, 1).astype(jnp.float32)
    if has_proj:
        ssc, bsc = fold_bn(params["bns_gamma"], params["bns_beta"],
                           params["bns_mean"], params["bns_var"])
        ws = (params["convs_w"].reshape(planes, Cin)
              * ssc[:, None]).astype(jnp.bfloat16)
        b2 = (b2c + bsc).reshape(planes, 1).astype(jnp.float32)
    else:
        ws = None
        b2 = b2c.reshape(planes, 1).astype(jnp.float32)

    kernel = _make_block_kernel(
        Cin=Cin, planes=planes, Ho=Ho, Wo=Wo, Wsrc=Wsrc, W1p=W1p, Ls1=Ls1,
        taps1=taps1, taps2=taps2, sc_phase=sc_phase, sc_off=sc_off,
        has_proj=has_proj)

    Mout = Ho * Wo
    inputs = [xph, w1, b1, w2, b2]
    in_specs = [
        pl.BlockSpec((None, P * Cin, L), lambda n: (n, 0, 0)),
        # Grid-invariant operands below are a few KiB each at CIFAR widths, so
        # default double-buffering costs nothing (no pl.Buffered override).
        pl.BlockSpec((planes, 9 * Cin), lambda n: (0, 0)),
        pl.BlockSpec((planes, 1), lambda n: (0, 0)),
        pl.BlockSpec((planes, 9 * planes), lambda n: (0, 0)),
        pl.BlockSpec((planes, 1), lambda n: (0, 0)),
    ]
    if has_proj:
        inputs.append(ws)
        in_specs.append(pl.BlockSpec((planes, Cin), lambda n: (0, 0)))

    out = pl.pallas_call(
        kernel,
        out_shape=jax.ShapeDtypeStruct((N, planes, Mout), jnp.float32),
        grid=(N,),                       # one image per grid step
        in_specs=in_specs,
        out_specs=pl.BlockSpec((None, planes, Mout), lambda n: (n, 0, 0)),
        scratch_shapes=[pltpu.VMEM((planes, Ls1), jnp.bfloat16)],
        compiler_params=pltpu.CompilerParams(
            dimension_semantics=("parallel",),          # megacore over batch
            vmem_limit_bytes=48 * 1024 * 1024),         # safe on v7x's 64 MiB
    )(*inputs)
    return out.reshape(N, planes, Ho, Wo)


# ---------------------------- Pure-JAX reference ----------------------------

def reference_forward(x, params, stride, eps=EPS):
    def conv(x, w, s, pad):
        return jax.lax.conv_general_dilated(
            x, w, (s, s), ((pad, pad), (pad, pad)),
            dimension_numbers=("NCHW", "OIHW", "NCHW"),
            precision=jax.lax.Precision.HIGHEST)

    def bn(x, g, b, m, v):
        inv = 1.0 / jnp.sqrt(v + eps)
        return ((x - m[None, :, None, None]) * inv[None, :, None, None]
                * g[None, :, None, None] + b[None, :, None, None])

    planes = params["conv1_w"].shape[0]
    out = jax.nn.relu(bn(conv(x, params["conv1_w"], stride, 1),
                         params["bn1_gamma"], params["bn1_beta"],
                         params["bn1_mean"], params["bn1_var"]))
    out = bn(conv(out, params["conv2_w"], 1, 1),
             params["bn2_gamma"], params["bn2_beta"],
             params["bn2_mean"], params["bn2_var"])
    if stride != 1 or x.shape[1] != planes:
        sc = bn(conv(x, params["convs_w"], stride, 0),
                params["bns_gamma"], params["bns_beta"],
                params["bns_mean"], params["bns_var"])
    else:
        sc = x
    return jax.nn.relu(out + sc)


# ----------------------------------- main ------------------------------------

def make_params(key, in_planes, planes, stride):
    keys = jax.random.split(key, 12)
    p = {
        "conv1_w": 0.1 * jax.random.normal(keys[0], (planes, in_planes, 3, 3), jnp.float32),
        "bn1_gamma": 0.5 + jax.random.uniform(keys[1], (planes,), jnp.float32),
        "bn1_beta": 0.1 * jax.random.normal(keys[2], (planes,), jnp.float32),
        "bn1_mean": 0.1 * jax.random.normal(keys[3], (planes,), jnp.float32),
        "bn1_var": 0.5 + jax.random.uniform(keys[4], (planes,), jnp.float32),
        "conv2_w": 0.1 * jax.random.normal(keys[5], (planes, planes, 3, 3), jnp.float32),
        "bn2_gamma": 0.5 + jax.random.uniform(keys[6], (planes,), jnp.float32),
        "bn2_beta": 0.1 * jax.random.normal(keys[7], (planes,), jnp.float32),
        "bn2_mean": 0.1 * jax.random.normal(keys[8], (planes,), jnp.float32),
        "bn2_var": 0.5 + jax.random.uniform(keys[9], (planes,), jnp.float32),
    }
    if stride != 1 or in_planes != planes:
        ks = jax.random.split(keys[10], 5)
        p.update({
            "convs_w": 0.1 * jax.random.normal(ks[0], (planes, in_planes, 1, 1), jnp.float32),
            "bns_gamma": 0.5 + jax.random.uniform(ks[1], (planes,), jnp.float32),
            "bns_beta": 0.1 * jax.random.normal(ks[2], (planes,), jnp.float32),
            "bns_mean": 0.1 * jax.random.normal(ks[3], (planes,), jnp.float32),
            "bns_var": 0.5 + jax.random.uniform(ks[4], (planes,), jnp.float32),
        })
    return p


if __name__ == "__main__":
    key = jax.random.PRNGKey(0)
    k_x, k_p1, k_p2 = jax.random.split(key, 3)

    N, H, W = 2, 16, 16
    x = jax.random.normal(k_x, (N, 4, H, W), jnp.float32)   # NCHW, like PyTorch

    fwd = jax.jit(basic_block_forward, static_argnums=(2,))

    # Config A: projection (conv1x1 + BN) shortcut, stride=2, 4 -> 8 channels.
    params_a = make_params(k_p1, 4, 8, 2)
    out_a = jax.block_until_ready(fwd(x, params_a, 2))
    ref_a = jax.block_until_ready(reference_forward(x, params_a, 2))
    assert out_a.shape == ref_a.shape == (N, 8, H // 2, W // 2)
    err_a = float(jnp.abs(out_a - ref_a).max())
    assert jnp.allclose(out_a, ref_a, rtol=5e-2, atol=5e-2), err_a

    # Config B: identity shortcut, stride=1, 8 -> 8 channels.
    x8 = jnp.concatenate([x, 0.5 * x], axis=1)
    params_b = make_params(k_p2, 8, 8, 1)
    out_b = jax.block_until_ready(fwd(x8, params_b, 1))
    ref_b = jax.block_until_ready(reference_forward(x8, params_b, 1))
    assert out_b.shape == ref_b.shape == (N, 8, H, W)
    err_b = float(jnp.abs(out_b - ref_b).max())
    assert jnp.allclose(out_b, ref_b, rtol=5e-2, atol=5e-2), err_b

    print("KERNEL_OK")
</pallas_src>

<mosaic_0001>
module attributes {stable_mosaic.version = 11 : i64} {
  func.func @kernel(%arg0: i32, %arg1: memref<1x16x128xbf16, #tpu.memory_space<vmem>>, %arg2: memref<8x36xbf16, #tpu.memory_space<vmem>>, %arg3: memref<8x1xf32, #tpu.memory_space<vmem>>, %arg4: memref<8x72xbf16, #tpu.memory_space<vmem>>, %arg5: memref<8x1xf32, #tpu.memory_space<vmem>>, %arg6: memref<8x4xbf16, #tpu.memory_space<vmem>>, %arg7: memref<1x8x64xf32, #tpu.memory_space<vmem>>, %arg8: memref<8x128xbf16, #tpu.memory_space<vmem>>) attributes {dimension_semantics = [#tpu.dimension_semantics<parallel>], iteration_bounds = array<i64: 2>, scalar_prefetch = 0 : i64, scratch_operands = 1 : i64, tpu.core_type = #tpu.core_type<tc>, window_params = [{transform_indices = @transform_0, window_bounds = array<i64: 1, 16, 128>}, {pipeline_mode = #tpu.pipeline_mode<synchronous>, transform_indices = @transform_1, window_bounds = array<i64: 8, 36>}, {pipeline_mode = #tpu.pipeline_mode<synchronous>, transform_indices = @transform_2, window_bounds = array<i64: 8, 1>}, {pipeline_mode = #tpu.pipeline_mode<synchronous>, transform_indices = @transform_3, window_bounds = array<i64: 8, 72>}, {pipeline_mode = #tpu.pipeline_mode<synchronous>, transform_indices = @transform_4, window_bounds = array<i64: 8, 1>}, {pipeline_mode = #tpu.pipeline_mode<synchronous>, transform_indices = @transform_5, window_bounds = array<i64: 8, 4>}, {transform_indices = @transform_6, window_bounds = array<i64: 1, 8, 64>}]} {
    %cst = arith.constant 0.000000e+00 : f32
    %0 = vector.broadcast %cst : f32 to vector<8x72xf32>
    %c0 = arith.constant 0 : index
    %c0_0 = arith.constant 0 : index
    %c0_1 = arith.constant 0 : index
    %1 = vector.load %arg1[%c0, %c0_0, %c0_1] : memref<1x16x128xbf16, #tpu.memory_space<vmem>>, vector<1x4x72xbf16>
    %2 = vector.shape_cast %1 : vector<1x4x72xbf16> to vector<4x72xbf16>
    %c0_2 = arith.constant 0 : index
    %c0_3 = arith.constant 0 : index
    %3 = vector.load %arg2[%c0_2, %c0_3] : memref<8x36xbf16, #tpu.memory_space<vmem>>, vector<8x4xbf16>
    %cst_4 = arith.constant dense<0.000000e+00> : vector<8x72xf32>
    %4 = tpu.matmul %3, %2, %cst_4 {dimension_numbers = #tpu.dot_dimension_numbers<[1], [0], [0], [1], [0, 0, 1, 1], [], []>} : vector<8x4xbf16>, vector<4x72xbf16>, vector<8x72xf32> -> vector<8x72xf32>
    %5 = arith.addf %0, %4 : vector<8x72xf32>
    %c0_5 = arith.constant 0 : index
    %c4 = arith.constant 4 : index
    %c0_6 = arith.constant 0 : index
    %6 = vector.load %arg1[%c0_5, %c4, %c0_6] : memref<1x16x128xbf16, #tpu.memory_space<vmem>>, vector<1x4x72xbf16>
    %7 = vector.shape_cast %6 : vector<1x4x72xbf16> to vector<4x72xbf16>
    %c0_7 = arith.constant 0 : index
    %c4_8 = arith.constant 4 : index
    %8 = vector.load %arg2[%c0_7, %c4_8] : memref<8x36xbf16, #tpu.memory_space<vmem>>, vector<8x4xbf16>
    %cst_9 = arith.constant dense<0.000000e+00> : vector<8x72xf32>
    %9 = tpu.matmul %8, %7, %cst_9 {dimension_numbers = #tpu.dot_dimension_numbers<[1], [0], [0], [1], [0, 0, 1, 1], [], []>} : vector<8x4xbf16>, vector<4x72xbf16>, vector<8x72xf32> -> vector<8x72xf32>
    %10 = arith.addf %5, %9 : vector<8x72xf32>
    %c0_10 = arith.constant 0 : index
    %c0_11 = arith.constant 0 : index
    %c1 = arith.constant 1 : index
    %11 = vector.load %arg1[%c0_10, %c0_11, %c1] : memref<1x16x128xbf16, #tpu.memory_space<vmem>>, vector<1x4x72xbf16>
    %12 = vector.shape_cast %11 : vector<1x4x72xbf16> to vector<4x72xbf16>
    %c0_12 = arith.constant 0 : index
    %c8 = arith.constant 8 : index
    %13 = vector.load %arg2[%c0_12, %c8] : memref<8x36xbf16, #tpu.memory_space<vmem>>, vector<8x4xbf16>
    %cst_13 = arith.constant dense<0.000000e+00> : vector<8x72xf32>
    %14 = tpu.matmul %13, %12, %cst_13 {dimension_numbers = #tpu.dot_dimension_numbers<[1], [0], [0], [1], [0, 0, 1, 1], [], []>} : vector<8x4xbf16>, vector<4x72xbf16>, vector<8x72xf32> -> vector<8x72xf32>
    %15 = arith.addf %10, %14 : vector<8x72xf32>
    %c0_14 = arith.constant 0 : index
    %c8_15 = arith.constant 8 : index
    %c0_16 = arith.constant 0 : index
    %16 = vector.load %arg1[%c0_14, %c8_15, %c0_16] : memref<1x16x128xbf16, #tpu.memory_space<vmem>>, vector<1x4x72xbf16>
    %17 = vector.shape_cast %16 : vector<1x4x72xbf16> to vector<4x72xbf16>
    %c0_17 = arith.constant 0 : index
    %c12 = arith.constant 12 : index
    %18 = vector.load %arg2[%c0_17, %c12] : memref<8x36xbf16, #tpu.memory_space<vmem>>, vector<8x4xbf16>
    %cst_18 = arith.constant dense<0.000000e+00> : vector<8x72xf32>
    %19 = tpu.matmul %18, %17, %cst_18 {dimension_numbers = #tpu.dot_dimension_numbers<[1], [0], [0], [1], [0, 0, 1, 1], [], []>} : vector<8x4xbf16>, vector<4x72xbf16>, vector<8x72xf32> -> vector<8x72xf32>
    %20 = arith.addf %15, %19 : vector<8x72xf32>
    %c0_19 = arith.constant 0 : index
    %c12_20 = arith.constant 12 : index
    %c0_21 = arith.constant 0 : index
    %21 = vector.load %arg1[%c0_19, %c12_20, %c0_21] : memref<1x16x128xbf16, #tpu.memory_space<vmem>>, vector<1x4x72xbf16>
    %22 = vector.shape_cast %21 : vector<1x4x72xbf16> to vector<4x72xbf16>
    %c0_22 = arith.constant 0 : index
    %c16 = arith.constant 16 : index
    %23 = vector.load %arg2[%c0_22, %c16] : memref<8x36xbf16, #tpu.memory_space<vmem>>, vector<8x4xbf16>
    %cst_23 = arith.constant dense<0.000000e+00> : vector<8x72xf32>
    %24 = tpu.matmul %23, %22, %cst_23 {dimension_numbers = #tpu.dot_dimension_numbers<[1], [0], [0], [1], [0, 0, 1, 1], [], []>} : vector<8x4xbf16>, vector<4x72xbf16>, vector<8x72xf32> -> vector<8x72xf32>
    %25 = arith.addf %20, %24 : vector<8x72xf32>
    %c0_24 = arith.constant 0 : index
    %c8_25 = arith.constant 8 : index
    %c1_26 = arith.constant 1 : index
    %26 = vector.load %arg1[%c0_24, %c8_25, %c1_26] : memref<1x16x128xbf16, #tpu.memory_space<vmem>>, vector<1x4x72xbf16>
    %27 = vector.shape_cast %26 : vector<1x4x72xbf16> to vector<4x72xbf16>
    %c0_27 = arith.constant 0 : index
    %c20 = arith.constant 20 : index
    %28 = vector.load %arg2[%c0_27, %c20] : memref<8x36xbf16, #tpu.memory_space<vmem>>, vector<8x4xbf16>
    %cst_28 = arith.constant dense<0.000000e+00> : vector<8x72xf32>
    %29 = tpu.matmul %28, %27, %cst_28 {dimension_numbers = #tpu.dot_dimension_numbers<[1], [0], [0], [1], [0, 0, 1, 1], [], []>} : vector<8x4xbf16>, vector<4x72xbf16>, vector<8x72xf32> -> vector<8x72xf32>
    %30 = arith.addf %25, %29 : vector<8x72xf32>
    %c0_29 = arith.constant 0 : index
    %c0_30 = arith.constant 0 : index
    %c9 = arith.constant 9 : index
    %31 = vector.load %arg1[%c0_29, %c0_30, %c9] : memref<1x16x128xbf16, #tpu.memory_space<vmem>>, vector<1x4x72xbf16>
    %32 = vector.shape_cast %31 : vector<1x4x72xbf16> to vector<4x72xbf16>
    %c0_31 = arith.constant 0 : index
    %c24 = arith.constant 24 : index
    %33 = vector.load %arg2[%c0_31, %c24] : memref<8x36xbf16, #tpu.memory_space<vmem>>, vector<8x4xbf16>
    %cst_32 = arith.constant dense<0.000000e+00> : vector<8x72xf32>
    %34 = tpu.matmul %33, %32, %cst_32 {dimension_numbers = #tpu.dot_dimension_numbers<[1], [0], [0], [1], [0, 0, 1, 1], [], []>} : vector<8x4xbf16>, vector<4x72xbf16>, vector<8x72xf32> -> vector<8x72xf32>
    %35 = arith.addf %30, %34 : vector<8x72xf32>
    %c0_33 = arith.constant 0 : index
    %c4_34 = arith.constant 4 : index
    %c9_35 = arith.constant 9 : index
    %36 = vector.load %arg1[%c0_33, %c4_34, %c9_35] : memref<1x16x128xbf16, #tpu.memory_space<vmem>>, vector<1x4x72xbf16>
    %37 = vector.shape_cast %36 : vector<1x4x72xbf16> to vector<4x72xbf16>
    %c0_36 = arith.constant 0 : index
    %c28 = arith.constant 28 : index
    %38 = vector.load %arg2[%c0_36, %c28] : memref<8x36xbf16, #tpu.memory_space<vmem>>, vector<8x4xbf16>
    %cst_37 = arith.constant dense<0.000000e+00> : vector<8x72xf32>
    %39 = tpu.matmul %38, %37, %cst_37 {dimension_numbers = #tpu.dot_dimension_numbers<[1], [0], [0], [1], [0, 0, 1, 1], [], []>} : vector<8x4xbf16>, vector<4x72xbf16>, vector<8x72xf32> -> vector<8x72xf32>
    %40 = arith.addf %35, %39 : vector<8x72xf32>
    %c0_38 = arith.constant 0 : index
    %c0_39 = arith.constant 0 : index
    %c10 = arith.constant 10 : index
    %41 = vector.load %arg1[%c0_38, %c0_39, %c10] : memref<1x16x128xbf16, #tpu.memory_space<vmem>>, vector<1x4x72xbf16>
    %42 = vector.shape_cast %41 : vector<1x4x72xbf16> to vector<4x72xbf16>
    %c0_40 = arith.constant 0 : index
    %c32 = arith.constant 32 : index
    %43 = vector.load %arg2[%c0_40, %c32] : memref<8x36xbf16, #tpu.memory_space<vmem>>, vector<8x4xbf16>
    %cst_41 = arith.constant dense<0.000000e+00> : vector<8x72xf32>
    %44 = tpu.matmul %43, %42, %cst_41 {dimension_numbers = #tpu.dot_dimension_numbers<[1], [0], [0], [1], [0, 0, 1, 1], [], []>} : vector<8x4xbf16>, vector<4x72xbf16>, vector<8x72xf32> -> vector<8x72xf32>
    %45 = arith.addf %40, %44 : vector<8x72xf32>
    %c0_42 = arith.constant 0 : index
    %c0_43 = arith.constant 0 : index
    %46 = vector.load %arg3[%c0_42, %c0_43] : memref<8x1xf32, #tpu.memory_space<vmem>>, vector<8x1xf32>
    %47 = vector.broadcast %46 : vector<8x1xf32> to vector<8x72xf32>
    %48 = arith.addf %45, %47 : vector<8x72xf32>
    %cst_44 = arith.constant 0.000000e+00 : f32
    %49 = vector.broadcast %cst_44 : f32 to vector<8x72xf32>
    %50 = arith.maximumf %48, %49 : vector<8x72xf32>
    %51 = arith.truncf %50 : vector<8x72xf32> to vector<8x72xbf16>
    %cst_45 = arith.constant 0.000000e+00 : bf16
    %52 = vector.broadcast %cst_45 : bf16 to vector<8x128xbf16>
    %c0_46 = arith.constant 0 : index
    %c0_47 = arith.constant 0 : index
    %53 = vector.load %arg8[%c0_46, %c0_47] : memref<8x128xbf16, #tpu.memory_space<vmem>>, vector<8x128xbf16>
    tpu.vector_store %arg8[%c0_46, %c0_47], %52 {strides = array<i32>} : memref<8x128xbf16, #tpu.memory_space<vmem>>, vector<8x128xbf16>,
    %54 = vector.extract_strided_slice %51 {offsets = [0, 0], sizes = [8, 8], strides = [1, 1]} : vector<8x72xbf16> to vector<8x8xbf16>
    %c0_48 = arith.constant 0 : index
    %c11 = arith.constant 11 : index
    %55 = vector.load %arg8[%c0_48, %c11] : memref<8x128xbf16, #tpu.memory_space<vmem>>, vector<8x8xbf16>
    tpu.vector_store %arg8[%c0_48, %c11], %54 {strides = array<i32>} : memref<8x128xbf16, #tpu.memory_space<vmem>>, vector<8x8xbf16>,
    %56 = vector.extract_strided_slice %51 {offsets = [0, 9], sizes = [8, 8], strides = [1, 1]} : vector<8x72xbf16> to vector<8x8xbf16>
    %c0_49 = arith.constant 0 : index
    %c21 = arith.constant 21 : index
    %57 = vector.load %arg8[%c0_49, %c21] : memref<8x128xbf16, #tpu.memory_space<vmem>>, vector<8x8xbf16>
    tpu.vector_store %arg8[%c0_49, %c21], %56 {strides = array<i32>} : memref<8x128xbf16, #tpu.memory_space<vmem>>, vector<8x8xbf16>,
    %58 = vector.extract_strided_slice %51 {offsets = [0, 18], sizes = [8, 8], strides = [1, 1]} : vector<8x72xbf16> to vector<8x8xbf16>
    %c0_50 = arith.constant 0 : index
    %c31 = arith.constant 31 : index
    %59 = vector.load %arg8[%c0_50, %c31] : memref<8x128xbf16, #tpu.memory_space<vmem>>, vector<8x8xbf16>
    tpu.vector_store %arg8[%c0_50, %c31], %58 {strides = array<i32>} : memref<8x128xbf16, #tpu.memory_space<vmem>>, vector<8x8xbf16>,
    %60 = vector.extract_strided_slice %51 {offsets = [0, 27], sizes = [8, 8], strides = [1, 1]} : vector<8x72xbf16> to vector<8x8xbf16>
    %c0_51 = arith.constant 0 : index
    %c41 = arith.constant 41 : index
    %61 = vector.load %arg8[%c0_51, %c41] : memref<8x128xbf16, #tpu.memory_space<vmem>>, vector<8x8xbf16>
    tpu.vector_store %arg8[%c0_51, %c41], %60 {strides = array<i32>} : memref<8x128xbf16, #tpu.memory_space<vmem>>, vector<8x8xbf16>,
    %62 = vector.extract_strided_slice %51 {offsets = [0, 36], sizes = [8, 8], strides = [1, 1]} : vector<8x72xbf16> to vector<8x8xbf16>
    %c0_52 = arith.constant 0 : index
    %c51 = arith.constant 51 : index
    %63 = vector.load %arg8[%c0_52, %c51] : memref<8x128xbf16, #tpu.memory_space<vmem>>, vector<8x8xbf16>
    tpu.vector_store %arg8[%c0_52, %c51], %62 {strides = array<i32>} : memref<8x128xbf16, #tpu.memory_space<vmem>>, vector<8x8xbf16>,
    %64 = vector.extract_strided_slice %51 {offsets = [0, 45], sizes = [8, 8], strides = [1, 1]} : vector<8x72xbf16> to vector<8x8xbf16>
    %c0_53 = arith.constant 0 : index
    %c61 = arith.constant 61 : index
    %65 = vector.load %arg8[%c0_53, %c61] : memref<8x128xbf16, #tpu.memory_space<vmem>>, vector<8x8xbf16>
    tpu.vector_store %arg8[%c0_53, %c61], %64 {strides = array<i32>} : memref<8x128xbf16, #tpu.memory_space<vmem>>, vector<8x8xbf16>,
    %66 = vector.extract_strided_slice %51 {offsets = [0, 54], sizes = [8, 8], strides = [1, 1]} : vector<8x72xbf16> to vector<8x8xbf16>
    %c0_54 = arith.constant 0 : index
    %c71 = arith.constant 71 : index
    %67 = vector.load %arg8[%c0_54, %c71] : memref<8x128xbf16, #tpu.memory_space<vmem>>, vector<8x8xbf16>
    tpu.vector_store %arg8[%c0_54, %c71], %66 {strides = array<i32>} : memref<8x128xbf16, #tpu.memory_space<vmem>>, vector<8x8xbf16>,
    %68 = vector.extract_strided_slice %51 {offsets = [0, 63], sizes = [8, 8], strides = [1, 1]} : vector<8x72xbf16> to vector<8x8xbf16>
    %c0_55 = arith.constant 0 : index
    %c81 = arith.constant 81 : index
    %69 = vector.load %arg8[%c0_55, %c81] : memref<8x128xbf16, #tpu.memory_space<vmem>>, vector<8x8xbf16>
    tpu.vector_store %arg8[%c0_55, %c81], %68 {strides = array<i32>} : memref<8x128xbf16, #tpu.memory_space<vmem>>, vector<8x8xbf16>,
    %cst_56 = arith.constant 0.000000e+00 : f32
    %70 = vector.broadcast %cst_56 : f32 to vector<8x80xf32>
    %c0_57 = arith.constant 0 : index
    %c0_58 = arith.constant 0 : index
    %71 = vector.load %arg8[%c0_57, %c0_58] : memref<8x128xbf16, #tpu.memory_space<vmem>>, vector<8x80xbf16>
    %c0_59 = arith.constant 0 : index
    %c0_60 = arith.constant 0 : index
    %72 = vector.load %arg4[%c0_59, %c0_60] : memref<8x72xbf16, #tpu.memory_space<vmem>>, vector<8x8xbf16>
    %cst_61 = arith.constant dense<0.000000e+00> : vector<8x80xf32>
    %73 = tpu.matmul %72, %71, %cst_61 {dimension_numbers = #tpu.dot_dimension_numbers<[1], [0], [0], [1], [0, 0, 1, 1], [], []>} : vector<8x8xbf16>, vector<8x80xbf16>, vector<8x80xf32> -> vector<8x80xf32>
    %74 = arith.addf %70, %73 : vector<8x80xf32>
    %c0_62 = arith.constant 0 : index
    %c1_63 = arith.constant 1 : index
    %75 = vector.load %arg8[%c0_62, %c1_63] : memref<8x128xbf16, #tpu.memory_space<vmem>>, vector<8x80xbf16>
    %c0_64 = arith.constant 0 : index
    %c8_65 = arith.constant 8 : index
    %76 = vector.load %arg4[%c0_64, %c8_65] : memref<8x72xbf16, #tpu.memory_space<vmem>>, vector<8x8xbf16>
    %cst_66 = arith.constant dense<0.000000e+00> : vector<8x80xf32>
    %77 = tpu.matmul %76, %75, %cst_66 {dimension_numbers = #tpu.dot_dimension_numbers<[1], [0], [0], [1], [0, 0, 1, 1], [], []>} : vector<8x8xbf16>, vector<8x80xbf16>, vector<8x80xf32> -> vector<8x80xf32>
    %78 = arith.addf %74, %77 : vector<8x80xf32>
    %c0_67 = arith.constant 0 : index
    %c2 = arith.constant 2 : index
    %79 = vector.load %arg8[%c0_67, %c2] : memref<8x128xbf16, #tpu.memory_space<vmem>>, vector<8x80xbf16>
    %c0_68 = arith.constant 0 : index
    %c16_69 = arith.constant 16 : index
    %80 = vector.load %arg4[%c0_68, %c16_69] : memref<8x72xbf16, #tpu.memory_space<vmem>>, vector<8x8xbf16>
    %cst_70 = arith.constant dense<0.000000e+00> : vector<8x80xf32>
    %81 = tpu.matmul %80, %79, %cst_70 {dimension_numbers = #tpu.dot_dimension_numbers<[1], [0], [0], [1], [0, 0, 1, 1], [], []>} : vector<8x8xbf16>, vector<8x80xbf16>, vector<8x80xf32> -> vector<8x80xf32>
    %82 = arith.addf %78, %81 : vector<8x80xf32>
    %c0_71 = arith.constant 0 : index
    %c10_72 = arith.constant 10 : index
    %83 = vector.load %arg8[%c0_71, %c10_72] : memref<8x128xbf16, #tpu.memory_space<vmem>>, vector<8x80xbf16>
    %c0_73 = arith.constant 0 : index
    %c24_74 = arith.constant 24 : index
    %84 = vector.load %arg4[%c0_73, %c24_74] : memref<8x72xbf16, #tpu.memory_space<vmem>>, vector<8x8xbf16>
    %cst_75 = arith.constant dense<0.000000e+00> : vector<8x80xf32>
    %85 = tpu.matmul %84, %83, %cst_75 {dimension_numbers = #tpu.dot_dimension_numbers<[1], [0], [0], [1], [0, 0, 1, 1], [], []>} : vector<8x8xbf16>, vector<8x80xbf16>, vector<8x80xf32> -> vector<8x80xf32>
    %86 = arith.addf %82, %85 : vector<8x80xf32>
    %c0_76 = arith.constant 0 : index
    %c11_77 = arith.constant 11 : index
    %87 = vector.load %arg8[%c0_76, %c11_77] : memref<8x128xbf16, #tpu.memory_space<vmem>>, vector<8x80xbf16>
    %c0_78 = arith.constant 0 : index
    %c32_79 = arith.constant 32 : index
    %88 = vector.load %arg4[%c0_78, %c32_79] : memref<8x72xbf16, #tpu.memory_space<vmem>>, vector<8x8xbf16>
    %cst_80 = arith.constant dense<0.000000e+00> : vector<8x80xf32>
    %89 = tpu.matmul %88, %87, %cst_80 {dimension_numbers = #tpu.dot_dimension_numbers<[1], [0], [0], [1], [0, 0, 1, 1], [], []>} : vector<8x8xbf16>, vector<8x80xbf16>, vector<8x80xf32> -> vector<8x80xf32>
    %90 = arith.addf %86, %89 : vector<8x80xf32>
    %c0_81 = arith.constant 0 : index
    %c12_82 = arith.constant 12 : index
    %91 = vector.load %arg8[%c0_81, %c12_82] : memref<8x128xbf16, #tpu.memory_space<vmem>>, vector<8x80xbf16>
    %c0_83 = arith.constant 0 : index
    %c40 = arith.constant 40 : index
    %92 = vector.load %arg4[%c0_83, %c40] : memref<8x72xbf16, #tpu.memory_space<vmem>>, vector<8x8xbf16>
    %cst_84 = arith.constant dense<0.000000e+00> : vector<8x80xf32>
    %93 = tpu.matmul %92, %91, %cst_84 {dimension_numbers = #tpu.dot_dimension_numbers<[1], [0], [0], [1], [0, 0, 1, 1], [], []>} : vector<8x8xbf16>, vector<8x80xbf16>, vector<8x80xf32> -> vector<8x80xf32>
    %94 = arith.addf %90, %93 : vector<8x80xf32>
    %c0_85 = arith.constant 0 : index
    %c20_86 = arith.constant 20 : index
    %95 = vector.load %arg8[%c0_85, %c20_86] : memref<8x128xbf16, #tpu.memory_space<vmem>>, vector<8x80xbf16>
    %c0_87 = arith.constant 0 : index
    %c48 = arith.constant 48 : index
    %96 = vector.load %arg4[%c0_87, %c48] : memref<8x72xbf16, #tpu.memory_space<vmem>>, vector<8x8xbf16>
    %cst_88 = arith.constant dense<0.000000e+00> : vector<8x80xf32>
    %97 = tpu.matmul %96, %95, %cst_88 {dimension_numbers = #tpu.dot_dimension_numbers<[1], [0], [0], [1], [0, 0, 1, 1], [], []>} : vector<8x8xbf16>, vector<8x80xbf16>, vector<8x80xf32> -> vector<8x80xf32>
    %98 = arith.addf %94, %97 : vector<8x80xf32>
    %c0_89 = arith.constant 0 : index
    %c21_90 = arith.constant 21 : index
    %99 = vector.load %arg8[%c0_89, %c21_90] : memref<8x128xbf16, #tpu.memory_space<vmem>>, vector<8x80xbf16>
    %c0_91 = arith.constant 0 : index
    %c56 = arith.constant 56 : index
    %100 = vector.load %arg4[%c0_91, %c56] : memref<8x72xbf16, #tpu.memory_space<vmem>>, vector<8x8xbf16>
    %cst_92 = arith.constant dense<0.000000e+00> : vector<8x80xf32>
    %101 = tpu.matmul %100, %99, %cst_92 {dimension_numbers = #tpu.dot_dimension_numbers<[1], [0], [0], [1], [0, 0, 1, 1], [], []>} : vector<8x8xbf16>, vector<8x80xbf16>, vector<8x80xf32> -> vector<8x80xf32>
    %102 = arith.addf %98, %101 : vector<8x80xf32>
    %c0_93 = arith.constant 0 : index
    %c22 = arith.constant 22 : index
    %103 = vector.load %arg8[%c0_93, %c22] : memref<8x128xbf16, #tpu.memory_space<vmem>>, vector<8x80xbf16>
    %c0_94 = arith.constant 0 : index
    %c64 = arith.constant 64 : index
    %104 = vector.load %arg4[%c0_94, %c64] : memref<8x72xbf16, #tpu.memory_space<vmem>>, vector<8x8xbf16>
    %cst_95 = arith.constant dense<0.000000e+00> : vector<8x80xf32>
    %105 = tpu.matmul %104, %103, %cst_95 {dimension_numbers = #tpu.dot_dimension_numbers<[1], [0], [0], [1], [0, 0, 1, 1], [], []>} : vector<8x8xbf16>, vector<8x80xbf16>, vector<8x80xf32> -> vector<8x80xf32>
    %106 = arith.addf %102, %105 : vector<8x80xf32>
    %c0_96 = arith.constant 0 : index
    %c0_97 = arith.constant 0 : index
    %107 = vector.load %arg5[%c0_96, %c0_97] : memref<8x1xf32, #tpu.memory_space<vmem>>, vector<8x1xf32>
    %108 = vector.broadcast %107 : vector<8x1xf32> to vector<8x80xf32>
    %109 = arith.addf %106, %108 : vector<8x80xf32>
    %c0_98 = arith.constant 0 : index
    %c12_99 = arith.constant 12 : index
    %c0_100 = arith.constant 0 : index
    %110 = vector.load %arg1[%c0_98, %c12_99, %c0_100] : memref<1x16x128xbf16, #tpu.memory_space<vmem>>, vector<1x4x72xbf16>
    %111 = vector.shape_cast %110 : vector<1x4x72xbf16> to vector<4x72xbf16>
    %c0_101 = arith.constant 0 : index
    %c0_102 = arith.constant 0 : index
    %112 = vector.load %arg6[%c0_101, %c0_102] : memref<8x4xbf16, #tpu.memory_space<vmem>>, vector<8x4xbf16>
    %cst_103 = arith.constant dense<0.000000e+00> : vector<8x72xf32>
    %113 = tpu.matmul %112, %111, %cst_103 {dimension_numbers = #tpu.dot_dimension_numbers<[1], [0], [0], [1], [0, 0, 1, 1], [], []>} : vector<8x4xbf16>, vector<4x72xbf16>, vector<8x72xf32> -> vector<8x72xf32>
    %114 = vector.extract_strided_slice %109 {offsets = [0, 0], sizes = [8, 8], strides = [1, 1]} : vector<8x80xf32> to vector<8x8xf32>
    %115 = vector.extract_strided_slice %113 {offsets = [0, 0], sizes = [8, 8], strides = [1, 1]} : vector<8x72xf32> to vector<8x8xf32>
    %116 = arith.addf %114, %115 : vector<8x8xf32>
    %cst_104 = arith.constant 0.000000e+00 : f32
    %117 = vector.broadcast %cst_104 : f32 to vector<8x8xf32>
    %118 = arith.maximumf %116, %117 : vector<8x8xf32>
    %c0_105 = arith.constant 0 : index
    %c0_106 = arith.constant 0 : index
    %c0_107 = arith.constant 0 : index
    %119 = vector.load %arg7[%c0_105, %c0_106, %c0_107] : memref<1x8x64xf32, #tpu.memory_space<vmem>>, vector<1x8x8xf32>
    %120 = vector.shape_cast %119 : vector<1x8x8xf32> to vector<8x8xf32>
    %121 = vector.shape_cast %118 : vector<8x8xf32> to vector<1x8x8xf32>
    tpu.vector_store %arg7[%c0_105, %c0_106, %c0_107], %121 {strides = array<i32>} : memref<1x8x64xf32, #tpu.memory_space<vmem>>, vector<1x8x8xf32>,
    %122 = vector.extract_strided_slice %109 {offsets = [0, 10], sizes = [8, 8], strides = [1, 1]} : vector<8x80xf32> to vector<8x8xf32>
    %123 = vector.extract_strided_slice %113 {offsets = [0, 9], sizes = [8, 8], strides = [1, 1]} : vector<8x72xf32> to vector<8x8xf32>
    %124 = arith.addf %122, %123 : vector<8x8xf32>
    %cst_108 = arith.constant 0.000000e+00 : f32
    %125 = vector.broadcast %cst_108 : f32 to vector<8x8xf32>
    %126 = arith.maximumf %124, %125 : vector<8x8xf32>
    %c0_109 = arith.constant 0 : index
    %c0_110 = arith.constant 0 : index
    %c8_111 = arith.constant 8 : index
    %127 = vector.load %arg7[%c0_109, %c0_110, %c8_111] : memref<1x8x64xf32, #tpu.memory_space<vmem>>, vector<1x8x8xf32>
    %128 = vector.shape_cast %127 : vector<1x8x8xf32> to vector<8x8xf32>
    %129 = vector.shape_cast %126 : vector<8x8xf32> to vector<1x8x8xf32>
    tpu.vector_store %arg7[%c0_109, %c0_110, %c8_111], %129 {strides = array<i32>} : memref<1x8x64xf32, #tpu.memory_space<vmem>>, vector<1x8x8xf32>,
    %130 = vector.extract_strided_slice %109 {offsets = [0, 20], sizes = [8, 8], strides = [1, 1]} : vector<8x80xf32> to vector<8x8xf32>
    %131 = vector.extract_strided_slice %113 {offsets = [0, 18], sizes = [8, 8], strides = [1, 1]} : vector<8x72xf32> to vector<8x8xf32>
    %132 = arith.addf %130, %131 : vector<8x8xf32>
    %cst_112 = arith.constant 0.000000e+00 : f32
    %133 = vector.broadcast %cst_112 : f32 to vector<8x8xf32>
    %134 = arith.maximumf %132, %133 : vector<8x8xf32>
    %c0_113 = arith.constant 0 : index
    %c0_114 = arith.constant 0 : index
    %c16_115 = arith.constant 16 : index
    %135 = vector.load %arg7[%c0_113, %c0_114, %c16_115] : memref<1x8x64xf32, #tpu.memory_space<vmem>>, vector<1x8x8xf32>
    %136 = vector.shape_cast %135 : vector<1x8x8xf32> to vector<8x8xf32>
    %137 = vector.shape_cast %134 : vector<8x8xf32> to vector<1x8x8xf32>
    tpu.vector_store %arg7[%c0_113, %c0_114, %c16_115], %137 {strides = array<i32>} : memref<1x8x64xf32, #tpu.memory_space<vmem>>, vector<1x8x8xf32>,
    %138 = vector.extract_strided_slice %109 {offsets = [0, 30], sizes = [8, 8], strides = [1, 1]} : vector<8x80xf32> to vector<8x8xf32>
    %139 = vector.extract_strided_slice %113 {offsets = [0, 27], sizes = [8, 8], strides = [1, 1]} : vector<8x72xf32> to vector<8x8xf32>
    %140 = arith.addf %138, %139 : vector<8x8xf32>
    %cst_116 = arith.constant 0.000000e+00 : f32
    %141 = vector.broadcast %cst_116 : f32 to vector<8x8xf32>
    %142 = arith.maximumf %140, %141 : vector<8x8xf32>
    %c0_117 = arith.constant 0 : index
    %c0_118 = arith.constant 0 : index
    %c24_119 = arith.constant 24 : index
    %143 = vector.load %arg7[%c0_117, %c0_118, %c24_119] : memref<1x8x64xf32, #tpu.memory_space<vmem>>, vector<1x8x8xf32>
    %144 = vector.shape_cast %143 : vector<1x8x8xf32> to vector<8x8xf32>
    %145 = vector.shape_cast %142 : vector<8x8xf32> to vector<1x8x8xf32>
    tpu.vector_store %arg7[%c0_117, %c0_118, %c24_119], %145 {strides = array<i32>} : memref<1x8x64xf32, #tpu.memory_space<vmem>>, vector<1x8x8xf32>,
    %146 = vector.extract_strided_slice %109 {offsets = [0, 40], sizes = [8, 8], strides = [1, 1]} : vector<8x80xf32> to vector<8x8xf32>
    %147 = vector.extract_strided_slice %113 {offsets = [0, 36], sizes = [8, 8], strides = [1, 1]} : vector<8x72xf32> to vector<8x8xf32>
    %148 = arith.addf %146, %147 : vector<8x8xf32>
    %cst_120 = arith.constant 0.000000e+00 : f32
    %149 = vector.broadcast %cst_120 : f32 to vector<8x8xf32>
    %150 = arith.maximumf %148, %149 : vector<8x8xf32>
    %c0_121 = arith.constant 0 : index
    %c0_122 = arith.constant 0 : index
    %c32_123 = arith.constant 32 : index
    %151 = vector.load %arg7[%c0_121, %c0_122, %c32_123] : memref<1x8x64xf32, #tpu.memory_space<vmem>>, vector<1x8x8xf32>
    %152 = vector.shape_cast %151 : vector<1x8x8xf32> to vector<8x8xf32>
    %153 = vector.shape_cast %150 : vector<8x8xf32> to vector<1x8x8xf32>
    tpu.vector_store %arg7[%c0_121, %c0_122, %c32_123], %153 {strides = array<i32>} : memref<1x8x64xf32, #tpu.memory_space<vmem>>, vector<1x8x8xf32>,
    %154 = vector.extract_strided_slice %109 {offsets = [0, 50], sizes = [8, 8], strides = [1, 1]} : vector<8x80xf32> to vector<8x8xf32>
    %155 = vector.extract_strided_slice %113 {offsets = [0, 45], sizes = [8, 8], strides = [1, 1]} : vector<8x72xf32> to vector<8x8xf32>
    %156 = arith.addf %154, %155 : vector<8x8xf32>
    %cst_124 = arith.constant 0.000000e+00 : f32
    %157 = vector.broadcast %cst_124 : f32 to vector<8x8xf32>
    %158 = arith.maximumf %156, %157 : vector<8x8xf32>
    %c0_125 = arith.constant 0 : index
    %c0_126 = arith.constant 0 : index
    %c40_127 = arith.constant 40 : index
    %159 = vector.load %arg7[%c0_125, %c0_126, %c40_127] : memref<1x8x64xf32, #tpu.memory_space<vmem>>, vector<1x8x8xf32>
    %160 = vector.shape_cast %159 : vector<1x8x8xf32> to vector<8x8xf32>
    %161 = vector.shape_cast %158 : vector<8x8xf32> to vector<1x8x8xf32>
    tpu.vector_store %arg7[%c0_125, %c0_126, %c40_127], %161 {strides = array<i32>} : memref<1x8x64xf32, #tpu.memory_space<vmem>>, vector<1x8x8xf32>,
    %162 = vector.extract_strided_slice %109 {offsets = [0, 60], sizes = [8, 8], strides = [1, 1]} : vector<8x80xf32> to vector<8x8xf32>
    %163 = vector.extract_strided_slice %113 {offsets = [0, 54], sizes = [8, 8], strides = [1, 1]} : vector<8x72xf32> to vector<8x8xf32>
    %164 = arith.addf %162, %163 : vector<8x8xf32>
    %cst_128 = arith.constant 0.000000e+00 : f32
    %165 = vector.broadcast %cst_128 : f32 to vector<8x8xf32>
    %166 = arith.maximumf %164, %165 : vector<8x8xf32>
    %c0_129 = arith.constant 0 : index
    %c0_130 = arith.constant 0 : index
    %c48_131 = arith.constant 48 : index
    %167 = vector.load %arg7[%c0_129, %c0_130, %c48_131] : memref<1x8x64xf32, #tpu.memory_space<vmem>>, vector<1x8x8xf32>
    %168 = vector.shape_cast %167 : vector<1x8x8xf32> to vector<8x8xf32>
    %169 = vector.shape_cast %166 : vector<8x8xf32> to vector<1x8x8xf32>
    tpu.vector_store %arg7[%c0_129, %c0_130, %c48_131], %169 {strides = array<i32>} : memref<1x8x64xf32, #tpu.memory_space<vmem>>, vector<1x8x8xf32>,
    %170 = vector.extract_strided_slice %109 {offsets = [0, 70], sizes = [8, 8], strides = [1, 1]} : vector<8x80xf32> to vector<8x8xf32>
    %171 = vector.extract_strided_slice %113 {offsets = [0, 63], sizes = [8, 8], strides = [1, 1]} : vector<8x72xf32> to vector<8x8xf32>
    %172 = arith.addf %170, %171 : vector<8x8xf32>
    %cst_132 = arith.constant 0.000000e+00 : f32
    %173 = vector.broadcast %cst_132 : f32 to vector<8x8xf32>
    %174 = arith.maximumf %172, %173 : vector<8x8xf32>
    %c0_133 = arith.constant 0 : index
    %c0_134 = arith.constant 0 : index
    %c56_135 = arith.constant 56 : index
    %175 = vector.load %arg7[%c0_133, %c0_134, %c56_135] : memref<1x8x64xf32, #tpu.memory_space<vmem>>, vector<1x8x8xf32>
    %176 = vector.shape_cast %175 : vector<1x8x8xf32> to vector<8x8xf32>
    %177 = vector.shape_cast %174 : vector<8x8xf32> to vector<1x8x8xf32>
    tpu.vector_store %arg7[%c0_133, %c0_134, %c56_135], %177 {strides = array<i32>} : memref<1x8x64xf32, #tpu.memory_space<vmem>>, vector<1x8x8xf32>,
    return
  }
  func.func @transform_0(%arg0: i32) -> (i32, i32, i32) {
    %c0_i32 = arith.constant 0 : i32
    %c0_i32_0 = arith.constant 0 : i32
    %c0_i32_1 = arith.constant 0 : i32
    return %arg0, %c0_i32, %c0_i32_0 : i32, i32, i32
  }
  func.func @transform_1(%arg0: i32) -> (i32, i32) {
    %c0_i32 = arith.constant 0 : i32
    %c0_i32_0 = arith.constant 0 : i32
    %c0_i32_1 = arith.constant 0 : i32
    return %c0_i32, %c0_i32_0 : i32, i32
  }
  func.func @transform_2(%arg0: i32) -> (i32, i32) {
    %c0_i32 = arith.constant 0 : i32
    %c0_i32_0 = arith.constant 0 : i32
    %c0_i32_1 = arith.constant 0 : i32
    return %c0_i32, %c0_i32_0 : i32, i32
  }
  func.func @transform_3(%arg0: i32) -> (i32, i32) {
    %c0_i32 = arith.constant 0 : i32
    %c0_i32_0 = arith.constant 0 : i32
    %c0_i32_1 = arith.constant 0 : i32
    return %c0_i32, %c0_i32_0 : i32, i32
  }
  func.func @transform_4(%arg0: i32) -> (i32, i32) {
    %c0_i32 = arith.constant 0 : i32
    %c0_i32_0 = arith.constant 0 : i32
    %c0_i32_1 = arith.constant 0 : i32
    return %c0_i32, %c0_i32_0 : i32, i32
  }
  func.func @transform_5(%arg0: i32) -> (i32, i32) {
    %c0_i32 = arith.constant 0 : i32
    %c0_i32_0 = arith.constant 0 : i32
    %c0_i32_1 = arith.constant 0 : i32
    return %c0_i32, %c0_i32_0 : i32, i32
  }
  func.func @transform_6(%arg0: i32) -> (i32, i32, i32) {
    %c0_i32 = arith.constant 0 : i32
    %c0_i32_0 = arith.constant 0 : i32
    %c0_i32_1 = arith.constant 0 : i32
    return %arg0, %c0_i32, %c0_i32_0 : i32, i32, i32
  }
}

</mosaic_0001>

<bundles_post_ra>
// kernel: basic_block_forward.1
= control target key start
LH: loop header
LB: loop body
LE: loop exit
PB: predicated region body
PF: predicated region fallthrough
CT: control target
= control target key end

     0   :  { %s1762_s21 = smov 0   ;;  %s1938_s0 = inlined_call_operand.vmem [shape: bf16[2,16,128], index: 0, kind: input, shape index: {}]   ;;  %s1939_s1 = inlined_call_operand.vmem [shape: bf16[8,36], index: 1, kind: input, shape index: {}]   ;;  %s1940_s2 = inlined_call_operand.vmem [shape: f32[8,1], index: 2, kind: input, shape index: {}]   ;;  %s1941_s3 = inlined_call_operand.vmem [shape: bf16[8,72], index: 3, kind: input, shape index: {}]   ;;  %s1942_s4 = inlined_call_operand.vmem [shape: f32[8,1], index: 4, kind: input, shape index: {}]   ;;  %s1943_s5 = inlined_call_operand.vmem [shape: bf16[8,4], index: 5, kind: input, shape index: {}]   ;;  %s1944_s6 = inlined_call_operand.vmem [shape: f32[2,8,64], index: 6, kind: output, shape index: {}]  }
   0x1 LB: > { %s1431_s22 = sadd.s32 4294967295, %s1686_s21   ;;  %p1435_p0 = scmp.ge.s32.totalorder %s1686_s21, 1  ;;  %s1686_s21 = sphi %s1762_s21, %s16_s21  }
   0x2   : > { %p212_p1 = scmp.lt.s32.totalorder %s1686_s21, 3 }
   0x4   : > { %p213_p2 = pnand %p1435_p0, %p212_p1 }
   0x5   : > { %p241_p3 = scmp.lt.s32.totalorder (!%p213_p2), %s1431_s22, 1  ;;  %s1690_s25 = smov (!%p213_p2), 124  }
   0x6   : > { %216 = sbr.rel (%p213_p2) target bundleno = 1084 (0x43c), region = 44  ;;  %s1691_s26 = smov (!%p213_p2), 120  }
   0x7   : > { %s1692_s7 = smov (!%p213_p2), 116   ;;  %s1693_s8 = smov (!%p213_p2), 127  }
   0x8   : > { %s1694_s9 = smov (!%p213_p2), 112   ;;  %s1695_s10 = smov (!%p213_p2), 108  }
   0x9   : > { %s1696_s11 = smov (!%p213_p2), 119   ;;  %s1697_s12 = smov (!%p213_p2), 104  }
   0xa   : > { %s1698_s13 = smov (!%p213_p2), 100   ;;  %s1699_s16 = smov (!%p213_p2), 118  }
   0xb   : > { %v252_v0 = vld [vmem:[%s1939_s1] sm:$0xf]  ;;  %v1688_v2 = vmov 0.0   ;;  %vm1689_vm0 = vmmov 0   ;;  %s1946_s22 = smov (!%p241_p3, %s1431_s22), 1  ;;  %vm267_vm1 = vcmask 1041408  }
   0xc   : > { %v1439_v1 = vcombine.low %v252_v0, %v252_v0  ;;  %1509 = vmatprep.subr.bf16.mxu0 %v1688_v2  ;;  %1515 = vmatprep.subr.bf16.mxu1 %v1688_v2  ;;  %s1469_s27 = sshll.u32 %s1946_s22, 3  ;;  %vm263_vm2 = vcmask 31744   ;;  %v722_v12 = vld [vmem:[%s1940_s2] sm:$0xff]  ;;  %v1700_v13 = vmov 0   ;;  %s1701_s17 = smov 96   ;;  %vm738_vm3 = vcmask 150616  }
   0xd   : > { %1511 = vmatprep.mubr.msk.bf16.mxu0 %vm1689_vm0, %v1688_v2  ;;  %1517 = vmatprep.mubr.msk.bf16.mxu1 %vm1689_vm0, %v1688_v2  ;;  %s1789_s30 = scalar_lea.vmem %s1938_s0, %s1469_s27  ;;  %731 = vst [vmem:[#allocation2] sm:$0xf] %v1700_v13  ;;  %s1702_s18 = smov 12   ;;  %vm743_vm4 = vcmask 232616   ;;  %vm748_vm5 = vcmask 314616   ;;  %vm753_vm6 = vcmask 396616  }
   0xe   : > { %257 = vrot.lane.b32.xlu0 %v1439_v1, %s1690_s25  ;;  %357 = vrot.lane.b32.xlu1 %v1439_v1, %s1691_s26  ;;  %v251_v3 = vld [vmem:[%s1789_s30] sm:$0x3]  ;;  %v411_v4 = vld [vmem:[%s1789_s30 + $0x4] sm:$0x3]  ;;  %s1703_s19 = smov 11   ;;  %s1704_s20 = smov 14  }
   0xf   : > { %v1443_v5 = vcombine.low %v251_v3, %v251_v3  ;;  %v1448_v6 = vcombine.low %v411_v4, %v411_v4  ;;  %v1675_v7 = vld [vmem:[%s1789_s30] ss:$0 sps:$4 sm:$0xcc]   ;;  %v315_v8 = vsel %vm267_vm1, %v251_v3, 0  ;;  %v418_v10 = vsel %vm267_vm1, %v411_v4, 0  ;;  %1670 = vset.pattern.permute.xlu1 %v1700_v13  ;;  %1671 = vset.pattern.permute.xlu0 %v1700_v13  ;;  %s1705_s23 = smov 13  }
  0x10   : > { %1516 = vmatpush3.bf16.msra.mxu1 %v315_v8  ;;  %v262_v9 = vrot.slane %v1675_v7, 2  ;;  %v1676_v16 = vld [vmem:[%s1789_s30 + $0x4] ss:$0 sps:$4 sm:$0xcc]   ;;  %s1706_s24 = smov 16   ;;  %s1707_s28 = smov 15  }
  0x11   : > { %1527 = vmatprep.subr.bf16.mxu1 %v1688_v2  ;;  %v467_v18 = vrot.slane %v1676_v16, 2  ;;  %s1709_s14 = smov 17   ;;  %s1710_s15 = smov 88   ;;  %vm758_vm7 = vcmask 478616   ;;  %vm763_vm8 = vcmask 560616   ;;  %vm768_vm9 = vcmask 642616  }
  0x12   : > { %412 = vrot.lane.b32.xlu1 %v1439_v1, %s1692_s7  ;;  %362 = vrot.lane.b32.xlu0 %v1443_v5, %s1693_s8  ;;  %v269_v11 = vsel %vm267_vm1, %v262_v9, 0  ;;  %vm773_vm10 = vcmask 724616   ;;  %vm791_vm11 = vcmask 1043456   ;;  %vm787_vm12 = vcmask 64512   ;;  %s1719_s29 = smov 1   ;;  %s1725_s22 = smov 122  }
  0x13   : > { %1518 = vmatmul.mubr.msk.bf16.vlgmr.msra.gmra.mxu1 %vm263_vm2, %v252_v0  ;;  %1510 = vmatpush3.bf16.msra.mxu0 %v269_v11  ;;  %v472_v23 = vsel %vm267_vm1, %v467_v18, 0  ;;  %vm1310_vm13 = vcmask 130112   ;;  %vm1321_vm14 = vcmask 195712   ;;  %vm1332_vm15 = vcmask 261312  }
  0x14   : > { %1528 = vmatpush3.bf16.msra.mxu1 %v418_v10  ;;  %1521 = vmatprep.subr.bf16.mxu0 %v1688_v2 }
  0x15   : > { %1529 = vmatprep.mubr.msk.bf16.mxu1 %vm1689_vm0, %v1688_v2  ;;  %1539 = vmatprep.subr.bf16.mxu1 %v1688_v2 }
  0x16   : > { %520 = vrot.lane.b32.xlu1 %v1448_v6, %s1693_s8  ;;  %462 = vrot.lane.b32.xlu0 %v1439_v1, %s1694_s9 }
  0x1a   : > { %515 = vrot.lane.b32.xlu1 %v1439_v1, %s1695_s10  ;;  %571 = vrot.lane.b32.xlu0 %v1443_v5, %s1696_s11 }
  0x1e   : > { %622 = vrot.lane.b32.xlu1 %v262_v9, %s1696_s11  ;;  %569 = vrot.lane.b32.xlu0 %v1439_v1, %s1697_s12  ;;  %s1720_s11 = smov 5  }
  0x22   : > { %620 = vrot.lane.b32.xlu1 %v1439_v1, %s1698_s13  ;;  %673 = vrot.lane.b32.xlu0 %v1443_v5, %s1699_s16  ;;  %s1708_s13 = smov 18  }
  0x26   : > { %725 = vperm.xlu1 %1670, %v722_v12   ;;  %671 = vrot.lane.b32.xlu0 %v1439_v1, %s1701_s17 }
  0x80   : > { %v258_v14 = vpop.permute.xlu0 %257  ;;  %v358_v15 = vpop.permute.xlu1 %357 }
  0x81   : > { %1512 = vmatmul.mubr.msk.bf16.vlgmr.msra.gmra.mxu0 %vm263_vm2, %v258_v14 }
  0x82   : > { %1523 = vmatprep.mubr.msk.bf16.mxu0 %vm1689_vm0, %v1688_v2 }
  0x84   : > { %v413_v17 = vpop.permute.xlu1 %412  ;;  %v363_v19 = vpop.permute.xlu0 %362 }
  0x85   : > { %1530 = vmatmul.mubr.msk.bf16.vlgmr.msra.gmra.mxu1 %vm263_vm2, %v413_v17  ;;  %v368_v20 = vsel %vm267_vm1, %v363_v19, 0 }
  0x86   : > { %1541 = vmatprep.mubr.msk.bf16.mxu1 %vm1689_vm0, %v1688_v2  ;;  %1522 = vmatpush3.bf16.msra.mxu0 %v368_v20  ;;  %v776_v20 = vld [vmem:[%s1941_s3] sm:$0xf] }
  0x87   : > { %1533 = vmatprep.subr.bf16.mxu0 %v1688_v2 }
  0x88   : > { %v521_v21 = vpop.permute.xlu1 %520  ;;  %v463_v24 = vpop.permute.xlu0 %462 }
  0x89   : > { %v526_v22 = vsel %vm267_vm1, %v521_v21, 0  ;;  %1524 = vmatmul.mubr.msk.bf16.vlgmr.msra.gmra.mxu0 %vm263_vm2, %v358_v15  ;;  %v1454_v21 = vcombine.low %v776_v20, %v776_v20 }
  0x8a   : > { %1540 = vmatpush3.bf16.msra.mxu1 %v526_v22  ;;  %1534 = vmatpush3.bf16.msra.mxu0 %v472_v23 }
  0x8b   : > { %1551 = vmatprep.subr.bf16.mxu1 %v1688_v2  ;;  %1535 = vmatprep.mubr.msk.bf16.mxu0 %vm1689_vm0, %v1688_v2 }
  0x8c   : > { %v516_v25 = vpop.permute.xlu1 %515  ;;  %1545 = vmatprep.subr.bf16.mxu0 %v1688_v2  ;;  %v572_v26 = vpop.permute.xlu0 %571 }
  0x8d   : > { %1542 = vmatmul.mubr.msk.bf16.vlgmr.msra.gmra.mxu1 %vm263_vm2, %v516_v25  ;;  %v577_v29 = vsel %vm267_vm1, %v572_v26, 0 }
  0x8e   : > { %1553 = vmatprep.mubr.msk.bf16.mxu1 %vm1689_vm0, %v1688_v2 }
  0x90   : > { %v623_v27 = vpop.permute.xlu1 %622  ;;  %v570_v30 = vpop.permute.xlu0 %569 }
  0x91   : > { %v628_v28 = vsel %vm267_vm1, %v623_v27, 0  ;;  %1536 = vmatmul.mubr.msk.bf16.vlgmr.msra.gmra.mxu0 %vm263_vm2, %v463_v24 }
  0x92   : > { %1552 = vmatpush3.bf16.msra.mxu1 %v628_v28  ;;  %1546 = vmatpush3.bf16.msra.mxu0 %v577_v29 }
  0x93   : > { %1563 = vmatprep.subr.bf16.mxu1 %v1688_v2  ;;  %1547 = vmatprep.mubr.msk.bf16.mxu0 %vm1689_vm0, %v1688_v2 }
  0x94   : > { %v621_v31 = vpop.permute.xlu1 %620  ;;  %1557 = vmatprep.subr.bf16.mxu0 %v1688_v2  ;;  %v674_v32 = vpop.permute.xlu0 %673 }
  0x95   : > { %1554 = vmatmul.mubr.msk.bf16.vlgmr.msra.gmra.mxu1 %vm263_vm2, %v621_v31  ;;  %v679_v33 = vsel %vm267_vm1, %v674_v32, 0 }
  0x96   : > { %1565 = vmatprep.mubr.msk.bf16.mxu1 %vm1689_vm0, %v1688_v2 }
  0x98   : > { %v672_v34 = vpop.permute.xlu0 %671 }
  0x99   : > { %1548 = vmatmul.mubr.msk.bf16.vlgmr.msra.gmra.mxu0 %vm263_vm2, %v570_v30 }
  0x9a   : > { %1558 = vmatpush3.bf16.msra.mxu0 %v679_v33  ;;  %1559 = vmatprep.mubr.msk.bf16.mxu0 %vm1689_vm0, %v1688_v2  ;;  %v1238_v33 = vld [vmem:[%s1942_s4] sm:$0xff] }
  0x9b   : > { %1569 = vmatprep.subr.bf16.mxu0 %v1688_v2 }
  0xa1   : > { %1560 = vmatmul.mubr.msk.bf16.vlgmr.msra.gmra.mxu0 %vm263_vm2, %v672_v34  ;;  %v726_v12 = vpop.permute.xlu1 %725 }
  0xa2   : > { %1571 = vmatprep.mubr.msk.bf16.mxu0 %vm1689_vm0, %v1688_v2 }
  0xd3   : > { %v351_v35 = vpop.f32.mrf.mxu1 }
  0xd5   : > { %v1519_v36 = vpop.f32.mrf.mxu1 }
  0xd7   : > { %v354_v37 = vpop.f32.mrf.mxu1 }
  0xd9   : > { %v1520_v38 = vpop.f32.mrf.mxu1 }
 0x141   : > { %v305_v39 = vpop.f32.mrf.mxu0 }
 0x142   : > { %v352_v52 = vadd.f32 %v351_v35, %v305_v39 }
 0x143   : > { %v1513_v40 = vpop.f32.mrf.mxu0 }
 0x145   : > { %v308_v41 = vpop.f32.mrf.mxu0  ;;  %v454_v42 = vpop.f32.mrf.mxu1 }
 0x147   : > { %v1514_v43 = vpop.f32.mrf.mxu0  ;;  %v1531_v44 = vpop.f32.mrf.mxu1 }
 0x149   : > { %v457_v45 = vpop.f32.mrf.mxu1  ;;  %v404_v47 = vpop.f32.mrf.mxu0 }
 0x14a   : > { %v410_v55 = vadd.f32 %v404_v47, %v352_v52 }
 0x14b   : > { %v1532_v46 = vpop.f32.mrf.mxu1  ;;  %v1525_v48 = vpop.f32.mrf.mxu0 }
 0x14c   : > { %v460_v60 = vadd.f32 %v454_v42, %v410_v55  ;;  %v1679_v42 = vld [vmem:[%s1789_s30 + $0x4] ss:$0 sps:$4 sm:$0xcc]  }
 0x14d   : > { %v562_v49 = vpop.f32.mrf.mxu1  ;;  %v407_v50 = vpop.f32.mrf.mxu0  ;;  %v1250_v47 = vrot.slane %v1679_v42, 2 }
 0x14f   : > { %v1543_v51 = vpop.f32.mrf.mxu1  ;;  %v1526_v53 = vpop.f32.mrf.mxu0  ;;  %v1255_v50 = vsel %vm267_vm1, %v1250_v47, 0  ;;  %vm1354_vm1 = vcmask 392512  }
 0x151   : > { %v565_v54 = vpop.f32.mrf.mxu1  ;;  %v508_v56 = vpop.f32.mrf.mxu0 }
 0x152   : > { %v514_v63 = vadd.f32 %v508_v56, %v460_v60  ;;  %v1246_v54 = vld [vmem:[%s1943_s5] sm:$0xf] }
 0x153   : > { %v1544_v57 = vpop.f32.mrf.mxu1  ;;  %v1537_v58 = vpop.f32.mrf.mxu0 }
 0x154   : > { %v568_v5 = vadd.f32 %v562_v49, %v514_v63 }
 0x155   : > { %v664_v59 = vpop.f32.mrf.mxu1  ;;  %v511_v61 = vpop.f32.mrf.mxu0 }
 0x157   : > { %v1555_v62 = vpop.f32.mrf.mxu1  ;;  %v1538_v0 = vpop.f32.mrf.mxu0 }
 0x159   : > { %v667_v1 = vpop.f32.mrf.mxu1  ;;  %v613_v3 = vpop.f32.mrf.mxu0 }
 0x15a   : > { %v619_v7 = vadd.f32 %v613_v3, %v568_v5 }
 0x15b   : > { %v1556_v4 = vpop.f32.mrf.mxu1  ;;  %v1549_v6 = vpop.f32.mrf.mxu0 }
 0x15c   : > { %v670_v10 = vadd.f32 %v664_v59, %v619_v7 }
 0x15d   : > { %v616_v8 = vpop.f32.mrf.mxu0 }
 0x15f   : > { %v1550_v9 = vpop.f32.mrf.mxu0 }
 0x161   : > { %v715_v11 = vpop.f32.mrf.mxu0 }
 0x162   : > { %v721_v13 = vadd.f32 %v715_v11, %v670_v10 }
 0x163   : > { %v1561_v14 = vpop.f32.mrf.mxu0 }
 0x164   : > { %v728_v15 = vadd.f32 %v726_v12, %v721_v13 }
 0x165   : > { %v718_v16 = vpop.f32.mrf.mxu0 }
 0x166   : > { %v729_v17 = vmax.f32 %v728_v15, 0.0 }
 0x167   : > { %v1562_v18 = vpop.f32.mrf.mxu0 }
 0x168   : > { %v1470_v19 = vpack.c.bf16 %v729_v17, %v729_v17 }
 0x16a   : > { %740 = vrot.lane.b32.xlu1 %v1470_v19, %s1702_s18  ;;  %735 = vrot.lane.b32.xlu0 %v1470_v19, %s1703_s19  ;;  %s1711_s18 = smov 72   ;;  %s1712_s19 = smov 80  }
 0x16e   : > { %750 = vrot.lane.b32.xlu1 %v1470_v19, %s1704_s20  ;;  %745 = vrot.lane.b32.xlu0 %v1470_v19, %s1705_s23  ;;  %s1713_s20 = smov 64   ;;  %s1717_s23 = smov 106  }
 0x172   : > { %760 = vrot.lane.b32.xlu1 %v1470_v19, %s1706_s24  ;;  %755 = vrot.lane.b32.xlu0 %v1470_v19, %s1707_s28 }
 0x176   : > { %770 = vrot.lane.b32.xlu1 %v1470_v19, %s1708_s13  ;;  %765 = vrot.lane.b32.xlu0 %v1470_v19, %s1709_s14  ;;  %s1721_s13 = smov 2   ;;  %s1722_s14 = smov 7  }
 0x17a   : > { %932 = vrot.lane.b32.xlu1 %v1454_v21, %s1697_s12  ;;  %s1715_s12 = smov 126  }
 0x17e   : > { %1034 = vrot.lane.b32.xlu1 %v1454_v21, %s1710_s15  ;;  %s1723_s15 = smov 4  }
 0x182   : > { %1136 = vrot.lane.b32.xlu1 %v1454_v21, %s1711_s18  ;;  %s1724_s18 = smov 6  }
 0x186   : > { %780 = vrot.lane.b32.xlu1 %v1454_v21, %s1691_s26 }
 0x18a   : > { %881 = vrot.lane.b32.xlu1 %v1454_v21, %s1694_s9  ;;  %s1714_s9 = smov 107  }
 0x18e   : > { %983 = vrot.lane.b32.xlu1 %v1454_v21, %s1701_s17  ;;  %s1716_s17 = smov 117  }
 0x192   : > { %1085 = vrot.lane.b32.xlu1 %v1454_v21, %s1712_s19 }
 0x196   : > { %1187 = vrot.lane.b32.xlu1 %v1454_v21, %s1713_s20 }
 0x1dc   : > { %v741_v22 = vpop.permute.xlu1 %740  ;;  %v736_v23 = vpop.permute.xlu0 %735 }
 0x1dd   : > { %739 = vst.msk [vmem:[#allocation2] sm:$0xf] %vm738_vm3, %v736_v23  ;;  %vm1376_vm3 = vcmask 523712  }
 0x1de   : > { %744 = vst.msk [vmem:[#allocation2] sm:$0xf] %vm743_vm4, %v741_v22 }
 0x1e0   : > { %v751_v24 = vpop.permute.xlu1 %750  ;;  %v746_v25 = vpop.permute.xlu0 %745 }
 0x1e1   : > { %749 = vst.msk [vmem:[#allocation2] sm:$0xf] %vm748_vm5, %v746_v25 }
 0x1e2   : > { %754 = vst.msk [vmem:[#allocation2] sm:$0xf] %vm753_vm6, %v751_v24 }
 0x1e4   : > { %v761_v26 = vpop.permute.xlu1 %760  ;;  %v756_v27 = vpop.permute.xlu0 %755 }
 0x1e5   : > { %759 = vst.msk [vmem:[#allocation2] sm:$0xf] %vm758_vm7, %v756_v27 }
 0x1e6   : > { %764 = vst.msk [vmem:[#allocation2] sm:$0xf] %vm763_vm8, %v761_v26 }
 0x1e8   : > { %v771_v28 = vpop.permute.xlu1 %770  ;;  %v766_v29 = vpop.permute.xlu0 %765 }
 0x1e9   : > { %769 = vst.msk [vmem:[#allocation2] sm:$0xf] %vm768_vm9, %v766_v29 }
 0x1ea   : > { %774 = vst.msk [vmem:[#allocation2] sm:$0xf] %vm773_vm10, %v771_v28 }
 0x1ec   : > { %v933_v34 = vpop.permute.xlu1 %932 }
 0x1f0   : > { %v1035_v37 = vpop.permute.xlu1 %1034 }
 0x1f1   : > { %v775_v30 = vld [vmem:[#allocation2] sm:$0xf] }
 0x1f2   : > { %v1455_v31 = vcombine.low %v775_v30, %v775_v30  ;;  %v839_v32 = vsel %vm791_vm11, %v775_v30, 0 }
 0x1f3   : > { %1570 = vmatpush3.bf16.msra.mxu0 %v839_v32 }
 0x1f4   : > { %934 = vrot.lane.b32.xlu0 %v1455_v31, %s1699_s16  ;;  %1581 = vmatprep.subr.bf16.mxu0 %v1688_v2  ;;  %v1137_v41 = vpop.permute.xlu1 %1136 }
 0x1f6   : > { %1572 = vmatmul.mubr.msk.bf16.vlgmr.msra.gmra.mxu0 %vm787_vm12, %v776_v20 }
 0x1f7   : > { %1583 = vmatprep.mubr.msk.bf16.mxu0 %vm1689_vm0, %v1688_v2 }
 0x1f8   : > { %1036 = vrot.lane.b32.xlu0 %v1455_v31, %s1692_s7  ;;  %v781_v46 = vpop.permute.xlu1 %780 }
 0x1fc   : > { %1138 = vrot.lane.b32.xlu0 %v1455_v31, %s1714_s9  ;;  %v882_v52 = vpop.permute.xlu1 %881  ;;  %s1919_s9 = scalar_lea.vmem %s1944_s6, %s1469_s27 }
 0x200   : > { %785 = vrot.lane.b32.xlu0 %v1455_v31, %s1693_s8  ;;  %v984_v56 = vpop.permute.xlu1 %983 }
 0x204   : > { %883 = vrot.lane.b32.xlu0 %v1455_v31, %s1715_s12  ;;  %v1086_v59 = vpop.permute.xlu1 %1085 }
 0x208   : > { %985 = vrot.lane.b32.xlu0 %v1455_v31, %s1716_s17  ;;  %v1188_v61 = vpop.permute.xlu1 %1187 }
 0x20c   : > { %1087 = vrot.lane.b32.xlu0 %v1455_v31, %s1695_s10  ;;  %s1718_s10 = smov 3  }
 0x210   : > { %1189 = vrot.lane.b32.xlu0 %v1455_v31, %s1717_s23 }
 0x214   : > { %1241 = vperm.xlu0 %1671, %v1238_v33  }
 0x266   : > { %v935_v35 = vpop.permute.xlu0 %934 }
 0x267   : > { %v940_v36 = vsel %vm791_vm11, %v935_v35, 0 }
 0x268   : > { %1582 = vmatpush3.bf16.msra.mxu0 %v940_v36 }
 0x269   : > { %1593 = vmatprep.subr.bf16.mxu0 %v1688_v2 }
 0x26a   : > { %v1037_v38 = vpop.permute.xlu0 %1036 }
 0x26b   : > { %v1042_v39 = vsel %vm791_vm11, %v1037_v38, 0  ;;  %1584 = vmatmul.mubr.msk.bf16.vlgmr.msra.gmra.mxu0 %vm787_vm12, %v933_v34 }
 0x26c   : > { %1594 = vmatpush3.bf16.msra.mxu0 %v1042_v39  ;;  %1595 = vmatprep.mubr.msk.bf16.mxu0 %vm1689_vm0, %v1688_v2 }
 0x26d   : > { %1605 = vmatprep.subr.bf16.mxu0 %v1688_v2 }
 0x26e   : > { %v1139_v40 = vpop.permute.xlu0 %1138 }
 0x26f   : > { %v1144_v44 = vsel %vm791_vm11, %v1139_v40, 0 }
 0x272   : > { %v786_v43 = vpop.permute.xlu0 %785 }
 0x273   : > { %v793_v45 = vsel %vm791_vm11, %v786_v43, 0  ;;  %1596 = vmatmul.mubr.msk.bf16.vlgmr.msra.gmra.mxu0 %vm787_vm12, %v1035_v37 }
 0x274   : > { %1606 = vmatpush3.bf16.msra.mxu0 %v1144_v44  ;;  %1564 = vmatpush3.bf16.msra.mxu1 %v793_v45 }
 0x275   : > { %1575 = vmatprep.subr.bf16.mxu1 %v1688_v2  ;;  %1607 = vmatprep.mubr.msk.bf16.mxu0 %vm1689_vm0, %v1688_v2 }
 0x276   : > { %v884_v48 = vpop.permute.xlu0 %883  ;;  %1617 = vmatprep.subr.bf16.mxu0 %v1688_v2 }
 0x277   : > { %v889_v49 = vsel %vm791_vm11, %v884_v48, 0  ;;  %1566 = vmatmul.mubr.msk.bf16.vlgmr.msra.gmra.mxu1 %vm787_vm12, %v781_v46 }
 0x278   : > { %1576 = vmatpush3.bf16.msra.mxu1 %v889_v49  ;;  %1577 = vmatprep.mubr.msk.bf16.mxu1 %vm1689_vm0, %v1688_v2 }
 0x279   : > { %1587 = vmatprep.subr.bf16.mxu1 %v1688_v2 }
 0x27a   : > { %v986_v51 = vpop.permute.xlu0 %985 }
 0x27b   : > { %1608 = vmatmul.mubr.msk.bf16.vlgmr.msra.gmra.mxu0 %vm787_vm12, %v1137_v41  ;;  %v991_v53 = vsel %vm791_vm11, %v986_v51, 0 }
 0x27c   : > { %1618 = vmatpush3.bf16.msra.mxu0 %v1255_v50  ;;  %1619 = vmatprep.mubr.msk.bf16.mxu0 %vm1689_vm0, %v1688_v2 }
 0x27e   : > { %v1088_v55 = vpop.permute.xlu0 %1087 }
 0x27f   : > { %1578 = vmatmul.mubr.msk.bf16.vlgmr.msra.gmra.mxu1 %vm787_vm12, %v882_v52  ;;  %v1093_v57 = vsel %vm791_vm11, %v1088_v55, 0 }
 0x280   : > { %1588 = vmatpush3.bf16.msra.mxu1 %v991_v53  ;;  %1589 = vmatprep.mubr.msk.bf16.mxu1 %vm1689_vm0, %v1688_v2 }
 0x281   : > { %1599 = vmatprep.subr.bf16.mxu1 %v1688_v2 }
 0x282   : > { %v1190_v58 = vpop.permute.xlu0 %1189 }
 0x283   : > { %1620 = vmatmul.mubr.msk.bf16.vlgmr.msra.gmra.mxu0 %vm263_vm2, %v1246_v54  ;;  %v1195_v60 = vsel %vm791_vm11, %v1190_v58, 0  ;;  %vm1365_vm2 = vcmask 458112  }
 0x287   : > { %1590 = vmatmul.mubr.msk.bf16.vlgmr.msra.gmra.mxu1 %vm787_vm12, %v984_v56 }
 0x288   : > { %1600 = vmatpush3.bf16.msra.mxu1 %v1093_v57  ;;  %1601 = vmatprep.mubr.msk.bf16.mxu1 %vm1689_vm0, %v1688_v2 }
 0x289   : > { %1611 = vmatprep.subr.bf16.mxu1 %v1688_v2 }
 0x28f   : > { %1602 = vmatmul.mubr.msk.bf16.vlgmr.msra.gmra.mxu1 %vm787_vm12, %v1086_v59  ;;  %v1242_v42 = vpop.permute.xlu0 %1241 }
 0x290   : > { %1612 = vmatpush3.bf16.msra.mxu1 %v1195_v60  ;;  %1613 = vmatprep.mubr.msk.bf16.mxu1 %vm1689_vm0, %v1688_v2  ;;  %vm1343_vm0 = vcmask 326912  }
 0x297   : > { %1614 = vmatmul.mubr.msk.bf16.vlgmr.msra.gmra.mxu1 %vm787_vm12, %v1188_v61 }
 0x2b6   : > { %v875_v62 = vpop.f32.mrf.mxu0 }
 0x2b8   : > { %v1573_v63 = vpop.f32.mrf.mxu0 }
 0x2ba   : > { %v878_v0 = vpop.f32.mrf.mxu0 }
 0x2bc   : > { %v1574_v1 = vpop.f32.mrf.mxu0 }
 0x32b   : > { %v976_v3 = vpop.f32.mrf.mxu0 }
 0x32d   : > { %v1585_v4 = vpop.f32.mrf.mxu0 }
 0x32f   : > { %v979_v5 = vpop.f32.mrf.mxu0 }
 0x331   : > { %v1586_v6 = vpop.f32.mrf.mxu0 }
 0x333   : > { %v1078_v7 = vpop.f32.mrf.mxu0 }
 0x335   : > { %v1597_v8 = vpop.f32.mrf.mxu0 }
 0x337   : > { %v829_v9 = vpop.f32.mrf.mxu1  ;;  %v1081_v10 = vpop.f32.mrf.mxu0 }
 0x338   : > { %v876_v22 = vadd.f32 %v875_v62, %v829_v9 }
 0x339   : > { %v1567_v11 = vpop.f32.mrf.mxu1  ;;  %v1598_v12 = vpop.f32.mrf.mxu0 }
 0x33b   : > { %v832_v13 = vpop.f32.mrf.mxu1  ;;  %v1180_v14 = vpop.f32.mrf.mxu0 }
 0x33d   : > { %v1568_v2 = vpop.f32.mrf.mxu1  ;;  %v1609_v15 = vpop.f32.mrf.mxu0 }
 0x33f   : > { %v925_v16 = vpop.f32.mrf.mxu1  ;;  %v1183_v17 = vpop.f32.mrf.mxu0 }
 0x340   : > { %v931_v25 = vadd.f32 %v925_v16, %v876_v22 }
 0x341   : > { %v1579_v18 = vpop.f32.mrf.mxu1  ;;  %v1610_v19 = vpop.f32.mrf.mxu0 }
 0x342   : > { %v982_v30 = vadd.f32 %v976_v3, %v931_v25 }
 0x343   : > { %v928_v20 = vpop.f32.mrf.mxu1  ;;  %v1291_v21 = vpop.f32.mrf.mxu0 }
 0x344   : > { %1323 = vrot.lane.b32.xlu0 %v1291_v21, %s1718_s10  ;;  %1301 = vrot.lane.b32.xlu1 %v1291_v21, %s1719_s29 }
 0x345   : > { %v1580_v23 = vpop.f32.mrf.mxu1  ;;  %v1621_v24 = vpop.f32.mrf.mxu0 }
 0x347   : > { %v1027_v26 = vpop.f32.mrf.mxu1  ;;  %v1294_v27 = vpop.f32.mrf.mxu0 }
 0x348   : > { %1345 = vrot.lane.b32.xlu0 %v1291_v21, %s1720_s11  ;;  %1312 = vrot.lane.b32.xlu1 %v1291_v21, %s1721_s13  ;;  %v1033_v32 = vadd.f32 %v1027_v26, %v982_v30 }
 0x349   : > { %v1591_v28 = vpop.f32.mrf.mxu1  ;;  %v1622_v29 = vpop.f32.mrf.mxu0 }
 0x34a   : > { %v1084_v35 = vadd.f32 %v1078_v7, %v1033_v32 }
 0x34b   : > { %v1030_v31 = vpop.f32.mrf.mxu1 }
 0x34c   : > { %1367 = vrot.lane.b32.xlu0 %v1291_v21, %s1722_s14  ;;  %1334 = vrot.lane.b32.xlu1 %v1291_v21, %s1723_s15 }
 0x34d   : > { %v1592_v33 = vpop.f32.mrf.mxu1 }
 0x34f   : > { %v1129_v34 = vpop.f32.mrf.mxu1 }
 0x350   : > { %1356 = vrot.lane.b32.xlu1 %v1291_v21, %s1724_s18  ;;  %v1135_v37 = vadd.f32 %v1129_v34, %v1084_v35 }
 0x351   : > { %v1603_v36 = vpop.f32.mrf.mxu1 }
 0x352   : > { %v1186_v40 = vadd.f32 %v1180_v14, %v1135_v37 }
 0x353   : > { %v1132_v38 = vpop.f32.mrf.mxu1 }
 0x355   : > { %v1604_v39 = vpop.f32.mrf.mxu1 }
 0x357   : > { %v1231_v41 = vpop.f32.mrf.mxu1 }
 0x358   : > { %v1237_v43 = vadd.f32 %v1231_v41, %v1186_v40 }
 0x359   : > { %v1615_v44 = vpop.f32.mrf.mxu1 }
 0x35a   : > { %v1244_v45 = vadd.f32 %v1242_v42, %v1237_v43 }
 0x35b   : > { %v1234_v46 = vpop.f32.mrf.mxu1 }
 0x35c   : > { %v1297_v47 = vadd.f32 %v1291_v21, %v1244_v45 }
 0x35d   : > { %v1616_v48 = vpop.f32.mrf.mxu1 }
 0x35e   : > { %v1298_v49 = vmax.f32 %v1297_v47, 0.0 }
 0x360   : > { %1299 = vst.msk [vmem:[%s1919_s9] sm:$0xff] %vm787_vm12, %v1298_v49 }
 0x3b6   : > { %v1302_v50 = vpop.permute.xlu1 %1301  ;;  %v1324_v51 = vpop.permute.xlu0 %1323 }
 0x3b7   : > { %v1304_v52 = vadd.f32 %v1302_v50, %v1244_v45  ;;  %v1326_v54 = vadd.f32 %v1324_v51, %v1244_v45 }
 0x3b9   : > { %v1305_v53 = vmax.f32 %v1304_v52, 0.0  ;;  %v1327_v58 = vmax.f32 %v1326_v54, 0.0 }
 0x3ba   : > { %v1313_v55 = vpop.permute.xlu1 %1312  ;;  %v1346_v56 = vpop.permute.xlu0 %1345 }
 0x3bb   : > { %v1315_v57 = vadd.f32 %v1313_v55, %v1244_v45  ;;  %1307 = vrot.lane.b32.xlu1 %v1305_v53, %s1715_s12  ;;  %v1348_v60 = vadd.f32 %v1346_v56, %v1244_v45 }
 0x3bd   : > { %v1316_v59 = vmax.f32 %v1315_v57, 0.0  ;;  %v1349_v0 = vmax.f32 %v1348_v60, 0.0 }
 0x3be   : > { %v1335_v61 = vpop.permute.xlu1 %1334  ;;  %v1368_v62 = vpop.permute.xlu0 %1367 }
 0x3bf   : > { %v1337_v63 = vadd.f32 %v1335_v61, %v1244_v45  ;;  %1318 = vrot.lane.b32.xlu0 %v1316_v59, %s1690_s25  ;;  %1329 = vrot.lane.b32.xlu1 %v1327_v58, %s1725_s22  ;;  %v1370_v3 = vadd.f32 %v1368_v62, %v1244_v45  ;;  %s1726_s25 = smov 114  }
 0x3c1   : > { %v1338_v1 = vmax.f32 %v1337_v63, 0.0  ;;  %v1371_v6 = vmax.f32 %v1370_v3, 0.0 }
 0x3c2   : > { %v1357_v4 = vpop.permute.xlu1 %1356 }
 0x3c3   : > { %v1359_v5 = vadd.f32 %v1357_v4, %v1244_v45  ;;  %1340 = vrot.lane.b32.xlu0 %v1338_v1, %s1691_s26  ;;  %1351 = vrot.lane.b32.xlu1 %v1349_v0, %s1699_s16 }
 0x3c5   : > { %v1360_v7 = vmax.f32 %v1359_v5, 0.0 }
 0x3c7   : > { %1362 = vrot.lane.b32.xlu0 %v1360_v7, %s1692_s7  ;;  %1373 = vrot.lane.b32.xlu1 %v1371_v6, %s1726_s25 }
 0x42d   : > { %v1308_v8 = vpop.permute.xlu1 %1307 }
 0x42e   : > { %1311 = vst.msk [vmem:[%s1919_s9] sm:$0xff] %vm1310_vm13, %v1308_v8 }
 0x431   : > { %v1319_v9 = vpop.permute.xlu0 %1318  ;;  %v1330_v10 = vpop.permute.xlu1 %1329 }
 0x432   : > { %1322 = vst.msk [vmem:[%s1919_s9] sm:$0xff] %vm1321_vm14, %v1319_v9 }
 0x433   : > { %1333 = vst.msk [vmem:[%s1919_s9] sm:$0xff] %vm1332_vm15, %v1330_v10 }
 0x435   : > { %v1341_v11 = vpop.permute.xlu0 %1340  ;;  %v1352_v12 = vpop.permute.xlu1 %1351 }
 0x436   : > { %1344 = vst.msk [vmem:[%s1919_s9] sm:$0xff] %vm1343_vm0, %v1341_v11 }
 0x437   : > { %1355 = vst.msk [vmem:[%s1919_s9] sm:$0xff] %vm1354_vm1, %v1352_v12 }
 0x439   : > { %v1363_v13 = vpop.permute.xlu0 %1362  ;;  %v1374_v14 = vpop.permute.xlu1 %1373 }
 0x43a   : > { %1366 = vst.msk [vmem:[%s1919_s9] sm:$0xff] %vm1365_vm2, %v1363_v13 }
 0x43b   : > { %1377 = vst.msk [vmem:[%s1919_s9] sm:$0xff] %vm1376_vm3, %v1374_v14 }
 0x43c PF: > { %s16_s21 = sadd.s32 1, %s1686_s21  }
 0x43d   : > { %p13_p4 = scmp.ge.s32.totalorder %s16_s21, 4  }
 0x43f   :  { %15 = sbr.rel (!%p13_p4) target bundleno = 1 (0x1), region = 74 }

</bundles_post_ra>
